<compile_context>
chip_gen: v7x
topology: tpu7x:2x2x1
jax: 0.10.0
libtpu: 0.0.40
codegen_flags: <defaults>
</compile_context>

<pallas_src>
import functools

import jax
import jax.numpy as jnp
from jax.experimental import pallas as pl
from jax.experimental.pallas import tpu as pltpu


def _cross_attn_kernel(x_ref, ctx_ref, wq_ref, wkv_ref, *rest,
                       bt, n, m, heads, dim_head, project_out):
    if project_out:
        wo_ref, bo_ref, o_ref = rest
    else:
        (o_ref,) = rest
    inner = heads * dim_head

    # (Bt, N, dim) -> (Bt*N, dim): leading-dim merge, layout-preserving (N % 8 == 0).
    xf = x_ref[...].reshape(bt * n, x_ref.shape[-1])
    cf = ctx_ref[...].reshape(bt * m, ctx_ref.shape[-1])

    # Fused all-head projections (attention scale already folded into Wq).
    q = jnp.dot(xf, wq_ref[...], preferred_element_type=jnp.float32)      # (Bt*N, inner)
    kv = jnp.dot(cf, wkv_ref[...], preferred_element_type=jnp.float32)    # (Bt*M, 2*inner)

    q3 = q.reshape(bt, n, inner)
    k3 = kv[:, :inner].reshape(bt, m, inner)
    v3 = kv[:, inner:].reshape(bt, m, inner)

    # Per-head attention, statically unrolled (heads is small).
    head_outs = []
    for h in range(heads):
        sl = slice(h * dim_head, (h + 1) * dim_head)
        qh, kh, vh = q3[..., sl], k3[..., sl], v3[..., sl]
        d = jnp.einsum('bnd,bmd->bnm', qh, kh,
                       preferred_element_type=jnp.float32)                # (Bt, N, M)
        d = d - jnp.max(d, axis=-1, keepdims=True)
        e = jnp.exp(d)
        a = e * pl.reciprocal(jnp.sum(e, axis=-1, keepdims=True), approx=True)
        head_outs.append(jnp.einsum('bnm,bmd->bnd', a, vh,
                                    preferred_element_type=jnp.float32))  # (Bt, N, dh)

    o3 = head_outs[0] if heads == 1 else jnp.concatenate(head_outs, axis=-1)
    of = o3.reshape(bt * n, inner)                                        # (Bt*N, inner)

    if project_out:
        out = jnp.dot(of, wo_ref[...],
                      preferred_element_type=jnp.float32) + bo_ref[...]   # (Bt*N, dim)
    else:
        out = of
    o_ref[...] = out.reshape(bt, n, out.shape[-1]).astype(o_ref.dtype)


def _pick_batch_tile(batch, n):
    """Batch rows per grid step: big enough for sublane-dense matmuls, but keep
    >= 2 grid steps when possible so both v7x TensorCores get work."""
    target = max(1, -(-128 // max(n, 1)))     # cdiv(128, n) rows target
    bt = 1
    for d in range(1, batch + 1):
        if batch % d == 0 and d <= target:
            bt = d
    if bt == batch and batch > 1:             # keep a >=2-iteration parallel axis
        for d in range(batch - 1, 0, -1):
            if batch % d == 0:
                bt = d
                break
    return bt


def prepare_cross_attention_params(wq, wkv, wo, bo, *, heads, dim_head,
                                   dtype=jnp.float32):
    """One-time (model-load) weight re-layout for the Pallas kernel.

    wq:  (inner, dim)          torch nn.Linear layout (out, in), no bias
    wkv: (2*inner, context_dim), rows [0:inner] -> K, rest -> V
    wo:  (dim, inner) or None  (None -> project_out == False, Identity)
    bo:  (dim,) or None
    """
    inner = heads * dim_head
    dim = wq.shape[1]
    assert wq.shape[0] == inner and wkv.shape[0] == 2 * inner
    scale = float(dim_head) ** -0.5
    params = {
        "wq": (wq.T * scale).astype(dtype),    # (dim, inner), scale folded in
        "wkv": wkv.T.astype(dtype),            # (cdim, 2*inner), cols [0:inner]=K
        "wo": None,
        "bo": None,
    }
    if wo is None:
        # PyTorch class invariant: Identity only when heads == 1 and dim_head == dim.
        assert heads == 1 and dim_head == dim, (
            "to_out == Identity requires heads == 1 and dim_head == dim")
    else:
        params["wo"] = wo.T.astype(dtype)      # (inner, dim)
        params["bo"] = bo.reshape(1, dim).astype(dtype)
    return params


def cross_attention(x, context, params, *, heads, dim_head):
    """Pallas implementation of CrossAttention.forward (inference).

    x:       (B, N, dim)
    context: (B, M, context_dim) or None (-> self-attention on x)
    params:  output of prepare_cross_attention_params
    returns: (B, N, dim)
    """
    context = x if context is None else context
    B, N, dim = x.shape
    _, M, cdim = context.shape
    inner = heads * dim_head
    project_out = params["wo"] is not None
    out_dim = dim if project_out else inner

    bt = _pick_batch_tile(B, N)
    grid = (B // bt,)

    kernel = functools.partial(_cross_attn_kernel, bt=bt, n=N, m=M,
                               heads=heads, dim_head=dim_head,
                               project_out=project_out)

    in_specs = [
        pl.BlockSpec((bt, N, dim),  lambda b: (b, 0, 0)),        # x
        pl.BlockSpec((bt, M, cdim), lambda b: (b, 0, 0)),        # context
        pl.BlockSpec((dim, inner),      lambda b: (0, 0)),       # Wq (resident)
        pl.BlockSpec((cdim, 2 * inner), lambda b: (0, 0)),       # Wkv (resident)
    ]
    args = [x, context, params["wq"], params["wkv"]]
    if project_out:
        in_specs += [pl.BlockSpec((inner, out_dim), lambda b: (0, 0)),   # Wo
                     pl.BlockSpec((1, out_dim),     lambda b: (0, 0))]   # bias
        args += [params["wo"], params["bo"]]

    return pl.pallas_call(
        kernel,
        out_shape=jax.ShapeDtypeStruct((B, N, out_dim), x.dtype),
        grid_spec=pltpu.PrefetchScalarGridSpec(
            num_scalar_prefetch=0,
            grid=grid,
            in_specs=in_specs,
            out_specs=pl.BlockSpec((bt, N, out_dim), lambda b: (b, 0, 0)),
        ),
        compiler_params=pltpu.CompilerParams(
            dimension_semantics=("parallel",)),
    )(*args)


def _reference(x, context, wq, wkv, wo, bo, *, heads, dim_head):
    # pure-JAX mirror of the PyTorch forward (dropout = identity)
    context = x if context is None else context
    B, N, _ = x.shape
    inner = heads * dim_head
    q = x @ wq.T
    kv = context @ wkv.T
    k, v = kv[..., :inner], kv[..., inner:]

    def split(t):
        return t.reshape(t.shape[0], t.shape[1], heads, dim_head).transpose(0, 2, 1, 3)

    q, k, v = map(split, (q, k, v))
    dots = jnp.einsum('bhnd,bhmd->bhnm', q, k) * (dim_head ** -0.5)
    attn = jax.nn.softmax(dots, axis=-1)
    o = jnp.einsum('bhnm,bhmd->bhnd', attn, v)
    o = o.transpose(0, 2, 1, 3).reshape(B, N, inner)
    if wo is None:
        return o
    return o @ wo.T + bo


if __name__ == "__main__":
    key = jax.random.PRNGKey(0)

    # --- main case: project_out=True (heads=2, dim_head=16, dim=32), self-attention ---
    B, N, dim = 2, 8, 32
    heads, dim_head = 2, 16
    inner = heads * dim_head
    context_dim = dim

    k1, k2, k3, k4, k5 = jax.random.split(key, 5)
    x = jax.random.normal(k1, (B, N, dim), dtype=jnp.float32)
    wq = 0.1 * jax.random.normal(k2, (inner, dim), dtype=jnp.float32)
    wkv = 0.1 * jax.random.normal(k3, (2 * inner, context_dim), dtype=jnp.float32)
    wo = 0.1 * jax.random.normal(k4, (dim, inner), dtype=jnp.float32)
    bo = 0.1 * jax.random.normal(k5, (dim,), dtype=jnp.float32)

    params = prepare_cross_attention_params(wq, wkv, wo, bo,
                                            heads=heads, dim_head=dim_head)
    out = jax.block_until_ready(
        cross_attention(x, None, params, heads=heads, dim_head=dim_head))
    ref = _reference(x, None, wq, wkv, wo, bo, heads=heads, dim_head=dim_head)
    assert out.shape == (B, N, dim), out.shape
    # tolerance accommodates the approximate (EUP) reciprocal in the softmax
    assert jnp.allclose(out, ref, atol=2e-3, rtol=2e-3), float(
        jnp.max(jnp.abs(out - ref)))

    # --- secondary case: project_out=False (heads=1, dim_head=dim), explicit context ---
    B2, N2, M2, dim2 = 2, 8, 16, 32
    h2, dh2 = 1, 32
    inner2 = h2 * dh2
    k6, k7, k8, k9 = jax.random.split(jax.random.PRNGKey(1), 4)
    x2 = jax.random.normal(k6, (B2, N2, dim2), dtype=jnp.float32)
    ctx2 = jax.random.normal(k7, (B2, M2, dim2), dtype=jnp.float32)
    wq2 = 0.1 * jax.random.normal(k8, (inner2, dim2), dtype=jnp.float32)
    wkv2 = 0.1 * jax.random.normal(k9, (2 * inner2, dim2), dtype=jnp.float32)

    params2 = prepare_cross_attention_params(wq2, wkv2, None, None,
                                             heads=h2, dim_head=dh2)
    out2 = jax.block_until_ready(
        cross_attention(x2, ctx2, params2, heads=h2, dim_head=dh2))
    ref2 = _reference(x2, ctx2, wq2, wkv2, None, None, heads=h2, dim_head=dh2)
    assert out2.shape == (B2, N2, dim2), out2.shape
    assert jnp.allclose(out2, ref2, atol=2e-3, rtol=2e-3), float(
        jnp.max(jnp.abs(out2 - ref2)))

    print("KERNEL_OK")
</pallas_src>

<mosaic_0001>
module attributes {stable_mosaic.version = 11 : i64} {
  func.func @_cross_attn_kernel(%arg0: i32, %arg1: memref<1x8x32xf32, #tpu.memory_space<vmem>>, %arg2: memref<1x8x32xf32, #tpu.memory_space<vmem>>, %arg3: memref<32x32xf32, #tpu.memory_space<vmem>>, %arg4: memref<32x64xf32, #tpu.memory_space<vmem>>, %arg5: memref<32x32xf32, #tpu.memory_space<vmem>>, %arg6: memref<1x32xf32, #tpu.memory_space<vmem>>, %arg7: memref<1x8x32xf32, #tpu.memory_space<vmem>>) attributes {dimension_semantics = [#tpu.dimension_semantics<parallel>], iteration_bounds = array<i64: 2>, scalar_prefetch = 0 : i64, scratch_operands = 0 : i64, tpu.core_type = #tpu.core_type<tc>, window_params = [{transform_indices = @transform_0, window_bounds = array<i64: 1, 8, 32>}, {transform_indices = @transform_1, window_bounds = array<i64: 1, 8, 32>}, {pipeline_mode = #tpu.pipeline_mode<synchronous>, transform_indices = @transform_2, window_bounds = array<i64: 32, 32>}, {pipeline_mode = #tpu.pipeline_mode<synchronous>, transform_indices = @transform_3, window_bounds = array<i64: 32, 64>}, {pipeline_mode = #tpu.pipeline_mode<synchronous>, transform_indices = @transform_4, window_bounds = array<i64: 32, 32>}, {pipeline_mode = #tpu.pipeline_mode<synchronous>, transform_indices = @transform_5, window_bounds = array<i64: 1, 32>}, {transform_indices = @transform_6, window_bounds = array<i64: 1, 8, 32>}]} {
    %c0 = arith.constant 0 : index
    %c0_0 = arith.constant 0 : index
    %c0_1 = arith.constant 0 : index
    %0 = vector.load %arg1[%c0, %c0_0, %c0_1] : memref<1x8x32xf32, #tpu.memory_space<vmem>>, vector<1x8x32xf32>
    %1 = vector.shape_cast %0 : vector<1x8x32xf32> to vector<8x32xf32>
    %c0_2 = arith.constant 0 : index
    %c0_3 = arith.constant 0 : index
    %c0_4 = arith.constant 0 : index
    %2 = vector.load %arg2[%c0_2, %c0_3, %c0_4] : memref<1x8x32xf32, #tpu.memory_space<vmem>>, vector<1x8x32xf32>
    %3 = vector.shape_cast %2 : vector<1x8x32xf32> to vector<8x32xf32>
    %c0_5 = arith.constant 0 : index
    %c0_6 = arith.constant 0 : index
    %4 = vector.load %arg3[%c0_5, %c0_6] : memref<32x32xf32, #tpu.memory_space<vmem>>, vector<32x32xf32>
    %cst = arith.constant dense<0.000000e+00> : vector<8x32xf32>
    %5 = tpu.matmul %1, %4, %cst {dimension_numbers = #tpu.dot_dimension_numbers<[1], [0], [0], [1], [0, 0, 1, 1], [], []>} : vector<8x32xf32>, vector<32x32xf32>, vector<8x32xf32> -> vector<8x32xf32>
    %c0_7 = arith.constant 0 : index
    %c0_8 = arith.constant 0 : index
    %6 = vector.load %arg4[%c0_7, %c0_8] : memref<32x64xf32, #tpu.memory_space<vmem>>, vector<32x64xf32>
    %cst_9 = arith.constant dense<0.000000e+00> : vector<8x64xf32>
    %7 = tpu.matmul %3, %6, %cst_9 {dimension_numbers = #tpu.dot_dimension_numbers<[1], [0], [0], [1], [0, 0, 1, 1], [], []>} : vector<8x32xf32>, vector<32x64xf32>, vector<8x64xf32> -> vector<8x64xf32>
    %8 = vector.shape_cast %5 : vector<8x32xf32> to vector<1x8x32xf32>
    %9 = vector.extract_strided_slice %7 {offsets = [0, 0], sizes = [8, 32], strides = [1, 1]} : vector<8x64xf32> to vector<8x32xf32>
    %10 = vector.shape_cast %9 : vector<8x32xf32> to vector<1x8x32xf32>
    %11 = vector.extract_strided_slice %7 {offsets = [0, 32], sizes = [8, 32], strides = [1, 1]} : vector<8x64xf32> to vector<8x32xf32>
    %12 = vector.shape_cast %11 : vector<8x32xf32> to vector<1x8x32xf32>
    %13 = vector.extract_strided_slice %8 {offsets = [0, 0, 0], sizes = [1, 8, 16], strides = [1, 1, 1]} : vector<1x8x32xf32> to vector<1x8x16xf32>
    %14 = vector.extract_strided_slice %10 {offsets = [0, 0, 0], sizes = [1, 8, 16], strides = [1, 1, 1]} : vector<1x8x32xf32> to vector<1x8x16xf32>
    %15 = vector.extract_strided_slice %12 {offsets = [0, 0, 0], sizes = [1, 8, 16], strides = [1, 1, 1]} : vector<1x8x32xf32> to vector<1x8x16xf32>
    "tpu.trace_start"() <{level = 10 : i32, message = "bnd,bmd->bnm"}> : () -> ()
    %cst_10 = arith.constant dense<0.000000e+00> : vector<1x8x8xf32>
    %16 = tpu.matmul %13, %14, %cst_10 {dimension_numbers = #tpu.dot_dimension_numbers<[2], [2], [1], [1], [0, 0, 0, 1, 1, 1], [0], [0]>} : vector<1x8x16xf32>, vector<1x8x16xf32>, vector<1x8x8xf32> -> vector<1x8x8xf32>
    "tpu.trace_stop"() : () -> ()
    %cst_11 = arith.constant dense<0xFF800000> : vector<1x8xf32>
    %17 = vector.multi_reduction <maximumf>, %16, %cst_11 [2] : vector<1x8x8xf32> to vector<1x8xf32>
    %18 = vector.shape_cast %17 : vector<1x8xf32> to vector<1x8x1xf32>
    %19 = vector.broadcast %18 : vector<1x8x1xf32> to vector<1x8x8xf32>
    %20 = arith.subf %16, %19 : vector<1x8x8xf32>
    %21 = math.exp %20 : vector<1x8x8xf32>
    %cst_12 = arith.constant dense<0.000000e+00> : vector<1x8xf32>
    %22 = vector.multi_reduction <add>, %21, %cst_12 [2] : vector<1x8x8xf32> to vector<1x8xf32>
    %23 = vector.shape_cast %22 : vector<1x8xf32> to vector<1x8x1xf32>
    %24 = tpu.reciprocal %23 {approx = true} : vector<1x8x1xf32> -> vector<1x8x1xf32>
    %25 = vector.broadcast %24 : vector<1x8x1xf32> to vector<1x8x8xf32>
    %26 = arith.mulf %21, %25 : vector<1x8x8xf32>
    "tpu.trace_start"() <{level = 10 : i32, message = "bnm,bmd->bnd"}> : () -> ()
    %cst_13 = arith.constant dense<0.000000e+00> : vector<1x8x16xf32>
    %27 = tpu.matmul %26, %15, %cst_13 {dimension_numbers = #tpu.dot_dimension_numbers<[2], [1], [1], [2], [0, 0, 0, 1, 1, 2], [0], [0]>} : vector<1x8x8xf32>, vector<1x8x16xf32>, vector<1x8x16xf32> -> vector<1x8x16xf32>
    "tpu.trace_stop"() : () -> ()
    %28 = vector.extract_strided_slice %8 {offsets = [0, 0, 16], sizes = [1, 8, 16], strides = [1, 1, 1]} : vector<1x8x32xf32> to vector<1x8x16xf32>
    %29 = vector.extract_strided_slice %10 {offsets = [0, 0, 16], sizes = [1, 8, 16], strides = [1, 1, 1]} : vector<1x8x32xf32> to vector<1x8x16xf32>
    %30 = vector.extract_strided_slice %12 {offsets = [0, 0, 16], sizes = [1, 8, 16], strides = [1, 1, 1]} : vector<1x8x32xf32> to vector<1x8x16xf32>
    "tpu.trace_start"() <{level = 10 : i32, message = "bnd,bmd->bnm"}> : () -> ()
    %cst_14 = arith.constant dense<0.000000e+00> : vector<1x8x8xf32>
    %31 = tpu.matmul %28, %29, %cst_14 {dimension_numbers = #tpu.dot_dimension_numbers<[2], [2], [1], [1], [0, 0, 0, 1, 1, 1], [0], [0]>} : vector<1x8x16xf32>, vector<1x8x16xf32>, vector<1x8x8xf32> -> vector<1x8x8xf32>
    "tpu.trace_stop"() : () -> ()
    %cst_15 = arith.constant dense<0xFF800000> : vector<1x8xf32>
    %32 = vector.multi_reduction <maximumf>, %31, %cst_15 [2] : vector<1x8x8xf32> to vector<1x8xf32>
    %33 = vector.shape_cast %32 : vector<1x8xf32> to vector<1x8x1xf32>
    %34 = vector.broadcast %33 : vector<1x8x1xf32> to vector<1x8x8xf32>
    %35 = arith.subf %31, %34 : vector<1x8x8xf32>
    %36 = math.exp %35 : vector<1x8x8xf32>
    %cst_16 = arith.constant dense<0.000000e+00> : vector<1x8xf32>
    %37 = vector.multi_reduction <add>, %36, %cst_16 [2] : vector<1x8x8xf32> to vector<1x8xf32>
    %38 = vector.shape_cast %37 : vector<1x8xf32> to vector<1x8x1xf32>
    %39 = tpu.reciprocal %38 {approx = true} : vector<1x8x1xf32> -> vector<1x8x1xf32>
    %40 = vector.broadcast %39 : vector<1x8x1xf32> to vector<1x8x8xf32>
    %41 = arith.mulf %36, %40 : vector<1x8x8xf32>
    "tpu.trace_start"() <{level = 10 : i32, message = "bnm,bmd->bnd"}> : () -> ()
    %cst_17 = arith.constant dense<0.000000e+00> : vector<1x8x16xf32>
    %42 = tpu.matmul %41, %30, %cst_17 {dimension_numbers = #tpu.dot_dimension_numbers<[2], [1], [1], [2], [0, 0, 0, 1, 1, 2], [0], [0]>} : vector<1x8x8xf32>, vector<1x8x16xf32>, vector<1x8x16xf32> -> vector<1x8x16xf32>
    "tpu.trace_stop"() : () -> ()
    %43 = tpu.concatenate %27, %42 in 2 : vector<1x8x16xf32>, vector<1x8x16xf32> -> vector<1x8x32xf32>
    %44 = vector.shape_cast %43 : vector<1x8x32xf32> to vector<8x32xf32>
    %c0_18 = arith.constant 0 : index
    %c0_19 = arith.constant 0 : index
    %45 = vector.load %arg5[%c0_18, %c0_19] : memref<32x32xf32, #tpu.memory_space<vmem>>, vector<32x32xf32>
    %cst_20 = arith.constant dense<0.000000e+00> : vector<8x32xf32>
    %46 = tpu.matmul %44, %45, %cst_20 {dimension_numbers = #tpu.dot_dimension_numbers<[1], [0], [0], [1], [0, 0, 1, 1], [], []>} : vector<8x32xf32>, vector<32x32xf32>, vector<8x32xf32> -> vector<8x32xf32>
    %c0_21 = arith.constant 0 : index
    %c0_22 = arith.constant 0 : index
    %47 = vector.load %arg6[%c0_21, %c0_22] : memref<1x32xf32, #tpu.memory_space<vmem>>, vector<1x32xf32>
    %48 = vector.broadcast %47 : vector<1x32xf32> to vector<8x32xf32>
    %49 = arith.addf %46, %48 : vector<8x32xf32>
    %50 = vector.shape_cast %49 : vector<8x32xf32> to vector<1x8x32xf32>
    %c0_23 = arith.constant 0 : index
    %c0_24 = arith.constant 0 : index
    %c0_25 = arith.constant 0 : index
    %51 = vector.load %arg7[%c0_23, %c0_24, %c0_25] : memref<1x8x32xf32, #tpu.memory_space<vmem>>, vector<1x8x32xf32>
    tpu.vector_store %arg7[%c0_23, %c0_24, %c0_25], %50 {strides = array<i32>} : memref<1x8x32xf32, #tpu.memory_space<vmem>>, vector<1x8x32xf32>,
    return
  }
  func.func @transform_0(%arg0: i32) -> (i32, i32, i32) {
    %c0_i32 = arith.constant 0 : i32
    %c0_i32_0 = arith.constant 0 : i32
    %c0_i32_1 = arith.constant 0 : i32
    return %arg0, %c0_i32, %c0_i32_0 : i32, i32, i32
  }
  func.func @transform_1(%arg0: i32) -> (i32, i32, i32) {
    %c0_i32 = arith.constant 0 : i32
    %c0_i32_0 = arith.constant 0 : i32
    %c0_i32_1 = arith.constant 0 : i32
    return %arg0, %c0_i32, %c0_i32_0 : i32, i32, i32
  }
  func.func @transform_2(%arg0: i32) -> (i32, i32) {
    %c0_i32 = arith.constant 0 : i32
    %c0_i32_0 = arith.constant 0 : i32
    %c0_i32_1 = arith.constant 0 : i32
    return %c0_i32, %c0_i32_0 : i32, i32
  }
  func.func @transform_3(%arg0: i32) -> (i32, i32) {
    %c0_i32 = arith.constant 0 : i32
    %c0_i32_0 = arith.constant 0 : i32
    %c0_i32_1 = arith.constant 0 : i32
    return %c0_i32, %c0_i32_0 : i32, i32
  }
  func.func @transform_4(%arg0: i32) -> (i32, i32) {
    %c0_i32 = arith.constant 0 : i32
    %c0_i32_0 = arith.constant 0 : i32
    %c0_i32_1 = arith.constant 0 : i32
    return %c0_i32, %c0_i32_0 : i32, i32
  }
  func.func @transform_5(%arg0: i32) -> (i32, i32) {
    %c0_i32 = arith.constant 0 : i32
    %c0_i32_0 = arith.constant 0 : i32
    %c0_i32_1 = arith.constant 0 : i32
    return %c0_i32, %c0_i32_0 : i32, i32
  }
  func.func @transform_6(%arg0: i32) -> (i32, i32, i32) {
    %c0_i32 = arith.constant 0 : i32
    %c0_i32_0 = arith.constant 0 : i32
    %c0_i32_1 = arith.constant 0 : i32
    return %arg0, %c0_i32, %c0_i32_0 : i32, i32, i32
  }
}

</mosaic_0001>

<bundles_post_ra>
// kernel: tpu_custom_call.1
= control target key start
LH: loop header
LB: loop body
LE: loop exit
PB: predicated region body
PF: predicated region fallthrough
CT: control target
= control target key end

     0   :  { %s1905_s0 = inlined_call_operand.hbm [shape: f32[2,8,32], index: 0, kind: input, shape index: {}]   ;;  %s1906_s1 = inlined_call_operand.hbm [shape: f32[2,8,32], index: 1, kind: input, shape index: {}]   ;;  %s1907_s2 = inlined_call_operand.hbm [shape: f32[32,32], index: 2, kind: input, shape index: {}]   ;;  %s1908_s3 = inlined_call_operand.hbm [shape: f32[32,64], index: 3, kind: input, shape index: {}]   ;;  %s1909_s4 = inlined_call_operand.hbm [shape: f32[32,32], index: 4, kind: input, shape index: {}]   ;;  %s1910_s5 = inlined_call_operand.vmem [shape: f32[1,32], index: 5, kind: input, shape index: {}]   ;;  %s1911_s6 = inlined_call_operand.hbm [shape: f32[2,8,32], index: 6, kind: output, shape index: {}]  }
   0x1   :  { %1916 = sst [smem:[#allocation17_spill]] %s1907_s2 }
   0x2   :  { %1917 = sst [smem:[#allocation18_spill]] %s1908_s3 }
   0x3   :  { %1918 = sst [smem:[#allocation19_spill]] %s1909_s4 }
   0x4   :  { %11 = vsyncpa [#allocation3], 0 }
   0x5   :  { %13 = vsyncpa [#allocation3 + $0x1], 0 }
   0x6   :  { %14 = vsyncpa [#allocation6], 0 }
   0x7   :  { %16 = vsyncpa [#allocation6 + $0x1], 0 }
   0x8   :  { %17 = vsyncpa [#allocation9], 0 }
   0x9   :  { %18 = vsyncpa [#allocation4], 0 }
   0xa   :  { %20 = vsyncpa [#allocation4 + $0x1], 0  ;;  %s1557_s21 = smov 0   ;;  %s1559_s22 = smov 0  }
   0xb   :  { %s1561_s23 = smov 0   ;;  %s1563_s24 = smov 0  }
   0xc LB: > { %s1578_s25 = sadd.s32 4294967295, %s1505_s24   ;;  %s1059_s26 = sadd.s32 4294967294, %s1505_s24   ;;  %s1505_s24 = sphi %s1563_s24, %s1942_s24   ;;  %s1501_s23 = sphi %s1561_s23, %s1941_s23   ;;  %s1497_s22 = sphi %s1559_s22, %s1940_s22   ;;  %s1493_s21 = sphi %s1557_s21, %s1939_s21  }
   0xd   : > { %p46_p0 = scmp.ne.s32.totalorder %s1497_s22, %s1493_s21  ;;  %p1912_p1 = scmp.eq.s32.totalorder %s1578_s25, 0 }
   0xe   : > { %p186_p3 = scmp.eq.s32.totalorder %s1059_s26, 1  ;;  %p1060_p5 = scmp.ge.s32.totalorder %s1505_s24, 1 }
   0xf   : > { %p1587_p4 = por %p1912_p1, %p46_p0  ;;  %p193_p7 = scmp.lt.s32.totalorder %s1505_s24, 3 }
  0x10   : > { %p1592_p6 = por %p186_p3, %p46_p0  ;;  %s1507_s30 = smov [#allocation7]  }
  0x11   : > { %s1919_s27 = scalar_select %p1587_p4, 1, 0 }
  0x12   : > { %s1920_s28 = scalar_select %p1592_p6, 1, 0 }
  0x13   : > { %p1597_p8 = pnand %p1060_p5, %p193_p7  ;;  %s205_s7 = sshll.u32 %s1507_s30, 4  ;;  %s1601_s7 = int_to_ptr.vmem [resolvable:$true] %s205_s7 }
  0x14   : > { %s1508_s9 = smov [#allocation8]   ;;  %s1509_s11 = smov [#allocation10]  }
  0x15   : > { %s1921_s29 = scalar_select %p1597_p8, 1, 0 }
  0x16   : > { %p1202_p9 = pneg %p1597_p8  ;;  %s218_s10 = sshll.u32 %s1508_s9, 4  ;;  %s1612_s10 = int_to_ptr.vmem [resolvable:$true] %s218_s10 }
  0x17   : > { %s1614_s12 = sshll.u32 %s1509_s11, 4  ;;  %s1923_s2 = sld [smem:[#allocation17_spill]]  ;;  %s232_s12 = int_to_ptr.vmem [resolvable:$true] %s1614_s12 }
  0x18   : > { %p1608_p11 = pnand %p1202_p9, %p1912_p1 }
  0x1a   : > { %p1624_p13 = pneg %p1608_p11 }
  0x1d   : > { %s1283_s15 = scalar_lea.hbm %s1923_s2, 512 }
  0x1e   : > { %p1284_p12 = scmp.ne.s32.totalorder %s1923_s2, %s1283_s15  ;;  %p1290_p5 = scmp.lt.u32.totalorder %s1283_s15, %s1923_s2 }
  0x20   : > { %p1286_p0 = pnand %p1624_p13, %p1284_p12 }
  0x22   : > { %p1287_p3 = pneg %p1286_p0 }
  0x24   : > { %p1292_p7 = pnand %p1290_p5, %p1287_p3 }
  0x26   : > { %1295 = shalt.err (!%p1292_p7)
}
  0x27   : > { %s1296_s26 = scalar_lea.vmem %s1601_s7, 512  ;;  %p1304_p2 = scmp.lt.s32.totalorder %s1601_s7, %s1601_s7 }
  0x28   : > { %p1297_p9 = scmp.ne.s32.totalorder %s1601_s7, %s1296_s26  ;;  %p1305_p6 = scmp.lt.s32.totalorder %s1296_s26, %s1296_s26 }
  0x2a   : > { %p1299_p10 = pnand %p1297_p9, %p1624_p13  ;;  %p1306_p12 = por %p1305_p6, %p1304_p2 }
  0x2c   : > { %p1300_p1 = pneg %p1299_p10 }
  0x2e   : > { %p1307_p0 = pnand %p1306_p12, %p1300_p1 }
  0x30   : > { %1310 = shalt.err (!%p1307_p0)
}
  0x31   : > { %s1510_s30 = smov 128   ;;  %s1511_s9 = smov 8  }
  0x32   : > { %1205 = dma.hbm_to_vmem [thread:$0]  (!%p1608_p11), %s1923_s2, 512, %s1601_s7, [#allocation6], %s1510_s30, %s1510_s30, %s1511_s9  }
  0x33   : > { %s1925_s3 = sld [smem:[#allocation18_spill]] }
  0x39   : > { %s1311_s16 = scalar_lea.hbm %s1925_s3, 512 }
  0x3a   : > { %p1312_p1 = scmp.ne.s32.totalorder %s1925_s3, %s1311_s16  ;;  %p1318_p10 = scmp.lt.u32.totalorder %s1311_s16, %s1925_s3 }
  0x3c   : > { %p1314_p2 = pnand %p1312_p1, %p1624_p13 }
  0x3e   : > { %p1315_p6 = pneg %p1314_p2 }
  0x40   : > { %p1320_p3 = pnand %p1318_p10, %p1315_p6 }
  0x42   : > { %1323 = shalt.err (!%p1320_p3)
}
  0x43   : > { %s1324_s7 = scalar_lea.vmem %s1612_s10, 512  ;;  %p1332_p12 = scmp.lt.s32.totalorder %s1612_s10, %s1612_s10 }
  0x44   : > { %p1325_p5 = scmp.ne.s32.totalorder %s1612_s10, %s1324_s7  ;;  %p1333_p0 = scmp.lt.s32.totalorder %s1324_s7, %s1324_s7 }
  0x46   : > { %p1327_p7 = pnand %p1325_p5, %p1624_p13  ;;  %p1334_p1 = por %p1333_p0, %p1332_p12 }
  0x48   : > { %p1328_p9 = pneg %p1327_p7 }
  0x4a   : > { %p1335_p2 = pnand %p1334_p1, %p1328_p9 }
  0x4c   : > { %1338 = shalt.err (!%p1335_p2)
}
  0x4d   : > { %1208 = dma.hbm_to_vmem [thread:$0]  (!%p1608_p11), %s1925_s3, 512, %s1612_s10, [#allocation9], %s1510_s30, %s1510_s30, %s1511_s9  }
  0x4e   : > { %s1926_s4 = sld [smem:[#allocation19_spill]] }
  0x54   : > { %s1339_s16 = scalar_lea.hbm %s1926_s4, 512 }
  0x55   : > { %p1340_p6 = scmp.ne.s32.totalorder %s1926_s4, %s1339_s16  ;;  %p1346_p5 = scmp.lt.u32.totalorder %s1339_s16, %s1926_s4 }
  0x57   : > { %p1342_p10 = pnand %p1340_p6, %p1624_p13 }
  0x59   : > { %p1343_p3 = pneg %p1342_p10 }
  0x5b   : > { %p1348_p7 = pnand %p1346_p5, %p1343_p3 }
  0x5d   : > { %1351 = shalt.err (!%p1348_p7)
}
  0x5e   : > { %s1352_s7 = scalar_lea.vmem %s232_s12, 512  ;;  %p1360_p1 = scmp.lt.s32.totalorder %s232_s12, %s232_s12 }
  0x5f   : > { %p1353_p9 = scmp.ne.s32.totalorder %s232_s12, %s1352_s7  ;;  %p1361_p2 = scmp.lt.s32.totalorder %s1352_s7, %s1352_s7 }
  0x61   : > { %p1355_p12 = pnand %p1353_p9, %p1624_p13  ;;  %p1362_p4 = por %p1361_p2, %p1360_p1 }
  0x63   : > { %p1356_p0 = pneg %p1355_p12 }
  0x65   : > { %p1363_p8 = pnand %p1362_p4, %p1356_p0 }
  0x67   : > { %1366 = shalt.err (!%p1363_p8)
}
  0x68   : > { %1211 = dma.hbm_to_vmem [thread:$0]  (!%p1608_p11), %s1926_s4, 512, %s232_s12, [#allocation9], %s1510_s30, %s1510_s30, %s1511_s9  }
  0x69   : > { %s1697_s18 = sadd.s32 1, %s1505_s24   ;;  %s33_s13 = sadd.s32 1, %s1501_s23 }
  0x6a   : > { %s30_s8 = ssub.s32 %s1505_s24, %s1697_s18  ;;  %p40_p8 = scmp.ne.s32.totalorder %s1501_s23, %s1497_s22 }
  0x6b   : > { %p31_p4 = scmp.eq.s32.totalorder %s30_s8, 0  ;;  %p41_p13 = scmp.eq.s32.totalorder %s1505_s24, 0 }
  0x6c   : > { %p1226_p6 = scmp.lt.s32.totalorder %s1505_s24, 2  ;;  %p1927_p3 = scmp.eq.s32.totalorder %s1578_s25, 1 }
  0x6d   : > { %s1707_s14 = scalar_select %p31_p4, %s1501_s23, %s33_s13  }
  0x6e   : > { %p42_p10 = por %p41_p13, %p40_p8  ;;  %p1711_p5 = por %p1927_p3, %p40_p8 }
  0x6f   : > { %s248_s16 = sand.u32 1, %s1501_s23   ;;  %s1066_s17 = sshll.u32 %s1505_s24, 7 }
  0x70   : > { %s1928_s15 = scalar_select %p1711_p5, 1, 0 }
  0x71   : > { %s1717_s12 = sshll.u32 %s248_s16, 3  ;;  %s1722_s19 = scalar_lea.hbm %s1905_s0, %s1066_s17 }
  0x72   : > { %s252_s20 = scalar_lea.vmem [#allocation2], %s1717_s12  ;;  %p1725_p11 = pnand %p1226_p6, %p42_p10 }
  0x73   : > { %s259_s26 = sshll.u32 %s252_s20, 4  ;;  %s1734_s8 = scalar_lea.hbm %s1906_s1, %s1066_s17  ;;  %s1729_s26 = int_to_ptr.vmem [resolvable:$true] %s259_s26 }
  0x74   : > { %s249_s13 = scalar_lea.sflag [#allocation3], %s248_s16  ;;  %s1367_s30 = scalar_lea.hbm %s1722_s19, 128 }
  0x75   : > { %p1368_p7 = scmp.ne.s32.totalorder %s1722_s19, %s1367_s30  ;;  %p1369_p9 = pneg %p1725_p11 }
  0x76   : > { %s1372_s2 = scalar_lea.hbm %s1905_s0, 256  ;;  %p1373_p1 = scmp.lt.u32.totalorder %s1722_s19, %s1905_s0 }
  0x77   : > { %p1370_p12 = pnand %p1369_p9, %p1368_p7  ;;  %p1374_p2 = scmp.lt.u32.totalorder %s1372_s2, %s1367_s30 }
  0x78   : > { %p1376_p8 = scmp.lt.u32.totalorder %s1367_s30, %s1722_s19 }
  0x79   : > { %p1371_p0 = pneg %p1370_p12  ;;  %p1375_p4 = por %p1374_p2, %p1373_p1 }
  0x7b   : > { %p1377_p13 = por %p1376_p8, %p1375_p4 }
  0x7d   : > { %p1378_p6 = pnand %p1377_p13, %p1371_p0 }
  0x7f   : > { %1381 = shalt.err (!%p1378_p6)
}
  0x80   : > { %s1382_s16 = scalar_lea.vmem %s1729_s26, 128  ;;  %s1512_s17 = smov [#allocation2]  }
  0x81   : > { %p1383_p10 = scmp.ne.s32.totalorder %s1729_s26, %s1382_s16  ;;  %s1387_s10 = sshll.u32 %s1512_s17, 4  ;;  %s1388_s10 = int_to_ptr.vmem [resolvable:$false] %s1387_s10 }
  0x82   : > { %s1389_s3 = scalar_lea.vmem %s1388_s10, 256  ;;  %p1390_p12 = scmp.lt.s32.totalorder %s1729_s26, %s1388_s10 }
  0x83   : > { %p1385_p3 = pnand %p1383_p10, %p1369_p9  ;;  %p1391_p1 = scmp.lt.s32.totalorder %s1389_s3, %s1382_s16 }
  0x85   : > { %p1386_p7 = pneg %p1385_p3  ;;  %p1392_p2 = por %p1391_p1, %p1390_p12 }
  0x87   : > { %p1393_p4 = pnand %p1392_p2, %p1386_p7 }
  0x89   : > { %1396 = shalt.err (!%p1393_p4)
}
  0x8a   : > { %1215 = dma.hbm_to_vmem [thread:$0]  (!%p1725_p11), %s1722_s19, 128, %s1729_s26, %s249_s13  }
  0x8b   : > { %s266_s2 = sand.u32 1, %s1505_s24   ;;  %s270_s4 = scalar_lea.vmem [#allocation5], %s1717_s12 }
  0x8c   : > { %s277_s11 = sshll.u32 %s270_s4, 4  ;;  %s267_s30 = scalar_lea.sflag [#allocation6], %s266_s2  ;;  %s278_s11 = int_to_ptr.vmem [resolvable:$true] %s277_s11 }
  0x8d   : > { %s1397_s9 = scalar_lea.hbm %s1734_s8, 128  ;;  %s1402_s17 = scalar_lea.hbm %s1906_s1, 256 }
  0x8e   : > { %p1398_p0 = scmp.ne.s32.totalorder %s1734_s8, %s1397_s9  ;;  %p1403_p6 = scmp.lt.u32.totalorder %s1734_s8, %s1906_s1 }
  0x8f   : > { %p1404_p10 = scmp.lt.u32.totalorder %s1402_s17, %s1397_s9  ;;  %p1406_p7 = scmp.lt.u32.totalorder %s1397_s9, %s1734_s8 }
  0x90   : > { %p1400_p8 = pnand %p1398_p0, %p1369_p9 }
  0x91   : > { %p1405_p3 = por %p1404_p10, %p1403_p6 }
  0x92   : > { %p1401_p13 = pneg %p1400_p8 }
  0x93   : > { %p1407_p12 = por %p1406_p7, %p1405_p3 }
  0x95   : > { %p1408_p1 = pnand %p1407_p12, %p1401_p13 }
  0x97   : > { %1411 = shalt.err (!%p1408_p1)
}
  0x98   : > { %s1412_s12 = scalar_lea.vmem %s278_s11, 128  ;;  %s1513_s19 = smov [#allocation5]  }
  0x99   : > { %p1413_p2 = scmp.ne.s32.totalorder %s278_s11, %s1412_s12  ;;  %s1417_s26 = sshll.u32 %s1513_s19, 4  ;;  %s1418_s26 = int_to_ptr.vmem [resolvable:$false] %s1417_s26 }
  0x9a   : > { %s1419_s13 = scalar_lea.vmem %s1418_s26, 256  ;;  %p1420_p8 = scmp.lt.s32.totalorder %s278_s11, %s1418_s26 }
  0x9b   : > { %p1415_p4 = pnand %p1413_p2, %p1369_p9  ;;  %p1421_p5 = scmp.lt.s32.totalorder %s1419_s13, %s1412_s12 }
  0x9d   : > { %p1416_p0 = pneg %p1415_p4  ;;  %p1422_p6 = por %p1421_p5, %p1420_p8 }
  0x9f   : > { %p1423_p10 = pnand %p1422_p6, %p1416_p0 }
  0xa1   : > { %1426 = shalt.err (!%p1423_p10)
}
  0xa2   : > { %1218 = dma.hbm_to_vmem [thread:$0]  (!%p1725_p11), %s1734_s8, 128, %s278_s11, %s267_s30  }
  0xa3   : > { %p1930_p13 = scmp.ne.s32.totalorder %s1921_s29, 0 }
  0xa4   : > { %s1785_s2 = sand.u32 (!%p1930_p13), 1, %s1497_s22   ;;  %p1931_p5 = scmp.ne.s32.totalorder (!%p1930_p13), %s1919_s27, 0 }
  0xa5   : > { %286 = sbr.rel (%p1930_p13) target bundleno = 1606 (0x646), region = 44  ;;  %s1788_s4 = sshll.u32 (!%p1930_p13), %s1785_s2, 3 }
  0xa6   : > { %s289_s9 = scalar_lea.sflag (!%p1930_p13), [#allocation3], %s1785_s2  ;;  %s292_s20 = scalar_lea.vmem (!%p1930_p13), [#allocation2], %s1788_s4 }
  0xac   : > { %1472 = dma.done.wait (%p1931_p5), %s289_s9, 128  }
  0xad   : > { %1474 = vsyncadd (%p1931_p5), %s289_s9, 4294967168  ;;  %s297_s29 = sand.u32 1, %s1578_s25   ;;  %s301_s8 = scalar_lea.vmem [#allocation5], %s1788_s4 }
  0xae   : > { %s298_s7 = scalar_lea.sflag [#allocation6], %s297_s29 }
  0xaf   : > { %1476 = dma.done.wait (%p1931_p5), %s298_s7, 128  }
  0xb0   : > { %1478 = vsyncadd (%p1931_p5), %s298_s7, 4294967168  ;;  %p1932_p11 = scmp.eq.s32.totalorder %s1578_s25, 0 }
  0xb2   : > { %1480 = dma.done.wait (%p1932_p11), [#allocation6], 512   ;;  %p1933_p9 = pmov %p1932_p11 }
  0xb4   : > { %1482 = vsyncadd (%p1933_p9), [#allocation6], 4294966784  ;;  %p1934_p3 = pmov %p1933_p9 }
  0xb6   : > { %1484 = dma.done.wait (%p1934_p3), [#allocation9], 1024   ;;  %p1935_p7 = pmov %p1934_p3 }
  0xb7   : > { %v1514_v0 = vmov 0.0|0.0   ;;  %vm1515_vm0 = vmmov 0   ;;  %v1516_v1 = vmov 0.0   ;;  %v427_v2 = vld [vmem:[#allocation8] sm:$0xff]  ;;  %v428_v3 = vld [vmem:[#allocation8 + $0x8] sm:$0xff]  ;;  %v429_v7 = vld [vmem:[#allocation8 + $0x10] sm:$0xff] }
  0xb8   : > { %1486 = vsyncadd (%p1935_p7), [#allocation9], 4294966272  ;;  %1172 = vmatprep.subr.bf16.mxu1 %v1514_v0  ;;  %1166 = vmatprep.subr.bf16.mxu0 %v1514_v0  ;;  %v349_v4 = vld [vmem:[#allocation7] sm:$0xff]  ;;  %v1173_v5 = vpack.c.bf16 %v428_v3, %v427_v2  ;;  %v350_v6 = vld [vmem:[#allocation7 + $0x8] sm:$0xff]  ;;  %vm353_vm1 = vcmask 261120   ;;  %vm504_vm2 = vcmask 130048  }
  0xb9   : > { %1132 = vmatprep.mubr.msk.f32.mxu1 %vm1515_vm0, %v1516_v1  ;;  %1121 = vmatprep.mubr.msk.f32.mxu0 %vm1515_vm0, %v1516_v1  ;;  %v430_v8 = vld [vmem:[#allocation8 + $0x18] sm:$0xff]  ;;  %v1167_v9 = vpack.c.bf16 %v350_v6, %v349_v4  ;;  %v351_v10 = vld [vmem:[#allocation7 + $0x10] sm:$0xff]  ;;  %v347_v15 = vld [vmem:[%s292_s20] sm:$0xff]  ;;  %s1517_s27 = smov 112   ;;  %vm581_vm3 = vcmask 64512   ;;  %s1518_s11 = smov 96  }
  0xba   : > { %v352_v11 = vld [vmem:[#allocation7 + $0x18] sm:$0xff]  ;;  %1174 = vmatpush3.bf16.msra.mxu1 %v1173_v5  ;;  %v1176_v12 = vpack.c.bf16 %v430_v8, %v429_v7  ;;  %s1519_s30 = smov 80   ;;  %v839_v46 = vld [vmem:[#allocation10] sm:$0xff]  ;;  %v840_v47 = vld [vmem:[#allocation10 + $0x8] sm:$0xff]  ;;  %s1520_s16 = smov 16  }
  0xbb   : > { %1168 = vmatpush3.bf16.msra.mxu0 %v1167_v9  ;;  %1175 = vmatprep.subr.bf16.mxu1 %v1514_v0  ;;  %v1170_v13 = vpack.c.bf16 %v352_v11, %v351_v10  ;;  %v348_v14 = vld [vmem:[%s301_s8] sm:$0xff]  ;;  %v1179_v49 = vpack.c.bf16 %v840_v47, %v839_v46  ;;  %v1084_v58 = vld [vmem:[%s1910_s5] ss:$0 sm:$0xff]  ;;  %s1087_s3 = sshll.u32 %s1578_s25, 7  ;;  %s346_s12 = scalar_lea.vmem [#allocation11], %s1788_s4 }
  0xbc   : > { %1169 = vmatprep.subr.bf16.mxu0 %v1514_v0  ;;  %v841_v48 = vld [vmem:[#allocation10 + $0x10] sm:$0xff]  ;;  %v842_v50 = vld [vmem:[#allocation10 + $0x18] sm:$0xff]  ;;  %s938_s19 = sshll.u32 %s346_s12, 4  ;;  %s1860_s9 = scalar_lea.hbm %s1911_s6, %s1087_s3  ;;  %s1862_s19 = int_to_ptr.vmem [resolvable:$true] %s938_s19 }
  0xbd   : > { %v1182_v51 = vpack.c.bf16 %v842_v50, %v841_v48  ;;  %s925_s20 = scalar_lea.sflag [#allocation4], %s1785_s2  ;;  %s1427_s29 = scalar_lea.vmem %s1862_s19, 128 }
  0xbe   : > { %1177 = vmatpush3.bf16.msra.mxu1 %v1176_v12  ;;  %p1428_p12 = scmp.ne.s32.totalorder %s1862_s19, %s1427_s29  ;;  %p1936_p1 = scmp.ne.s32.totalorder %s1928_s15, 0 }
  0xbf   : > { %1171 = vmatpush3.bf16.msra.mxu0 %v1170_v13  ;;  %1135 = vmatprep.subr.mxu1 %v1516_v1  ;;  %s1521_s25 = smov [#allocation11]  }
  0xc0   : > { %1145 = vmatprep.subr.mxu0 %v1516_v1  ;;  %p1429_p2 = pnand %p1428_p12, %p1936_p1  ;;  %s1431_s4 = sshll.u32 %s1521_s25, 4  ;;  %s1432_s4 = int_to_ptr.vmem [resolvable:$false] %s1431_s4 }
  0xc1   : > { %1133 = vmatmul.mubr.msk.f32.vlgmr.msra.gmra.mrb[0].mxu1 %vm353_vm1, %v348_v14  ;;  %s1433_s7 = scalar_lea.vmem %s1432_s4, 256  ;;  %p1434_p0 = scmp.lt.s32.totalorder %s1862_s19, %s1432_s4 }
  0xc2   : > { %1122 = vmatmul.mubr.msk.f32.vlgmr.msra.gmra.mrb[0].mxu0 %vm353_vm1, %v347_v15  ;;  %1137 = vmatprep.mubr.msk.f32.mxu1 %vm1515_vm0, %v1516_v1  ;;  %p1430_p4 = pneg %p1429_p2  ;;  %p1435_p8 = scmp.lt.s32.totalorder %s1433_s7, %s1427_s29 }
  0xc3   : > { %1147 = vmatprep.mubr.msk.f32.mxu0 %vm1515_vm0, %v1516_v1 }
  0xc4   : > { %p1436_p6 = por %p1435_p8, %p1434_p0 }
  0xc6   : > { %p1437_p10 = pnand %p1436_p6, %p1430_p4 }
 0x194   : > { %v500_v16 = vpop.f32.mrb[0].mxu1 }
 0x195   : > { %671 = vrot.lane.b32.xlu0 %v500_v16, %s1517_s27  ;;  %v1134_v17 = vpop.f32.mrb[1].mxu1  ;;  %1136 = vmatpush3.xpose.msk.msra.mxu1 %vm504_vm2, %v500_v16  ;;  %v423_v18 = vpop.f32.mrb[0].mxu0 }
 0x196   : > { %v1123_v19 = vpop.f32.mrb[1].mxu0  ;;  %1140 = vmatprep.subr.mxu1 %v1516_v1 }
 0x198   : > { %1138 = vmatmul.mubr.msk.f32.vlgmr.msra.gmra.mrb[2].mxu1 %vm504_vm2, %v423_v18 }
 0x199   : > { %669 = vrot.lane.b32.xlu0 %v423_v18, %s1517_s27  ;;  %1142 = vmatprep.mubr.msk.f32.mxu1 %vm1515_vm0, %v1516_v1 }
 0x207   : > { %v672_v20 = vpop.permute.xlu0 %671 }
 0x208   : > { %1146 = vmatpush3.xpose.msk.msra.mxu0 %vm504_vm2, %v672_v20 }
 0x209   : > { %1178 = vmatprep.subr.bf16.mxu0 %v1514_v0 }
 0x20b   : > { %v670_v21 = vpop.permute.xlu0 %669 }
 0x20c   : > { %1148 = vmatmul.mubr.msk.f32.vlgmr.msra.gmra.mrb[2].mxu0 %vm504_vm2, %v670_v21 }
 0x20d   : > { %1163 = vmatprep.mubr.msk.f32.mxu0 %vm1515_vm0, %v1516_v1  ;;  %1180 = vmatpush3.bf16.msra.mxu0 %v1179_v49 }
 0x20e   : > { %1181 = vmatprep.subr.bf16.mxu0 %v1514_v0 }
 0x211   : > { %1183 = vmatpush3.bf16.msra.mxu0 %v1182_v51 }
 0x26b   : > { %v577_v22 = vpop.f32.mrb[2].mxu1 }
 0x26c   : > { %v1139_v23 = vpop.f32.mrb[3].mxu1  ;;  %v582_v24 = vsel %vm581_vm3, %v577_v22, -inf }
 0x26d   : > { %583 = vmax.xlane.f32.xlu1 %v582_v24 }
 0x2df   : > { %v743_v25 = vpop.f32.mrb[2].mxu0 }
 0x2e0   : > { %v1149_v26 = vpop.f32.mrb[3].mxu0  ;;  %v747_v27 = vsel %vm581_vm3, %v743_v25, -inf }
 0x2e1   : > { %748 = vmax.xlane.f32.xlu1 %v747_v27 }
 0x2f2   : > { %593 = vrot.lane.b32.xlu1 %v500_v16, %s1518_s11 }
 0x2fa   : > { %v584_v28 = vpop.xlane.xlu1 %583 }
 0x2fb   : > { %v585_v29 = vsub.f32 %v577_v22, %v584_v28 }
 0x2fd   : > { %v586_v30 = vmul.f32 1.442695, %v585_v29 }
 0x2ff   : > { %1275 = vpow2.f32 %v586_v30 }
 0x309   : > { %v1276_v31 = vpop.eup %1275 }
 0x30a   : > { %v588_v32 = vsel %vm581_vm3, %v1276_v31, 0.0 }
 0x30b   : > { %589 = vadd.xlane.f32.xlu0 %v588_v32 }
 0x36e   : > { %v749_v33 = vpop.xlane.xlu1 %748 }
 0x36f   : > { %v750_v34 = vsub.f32 %v743_v25, %v749_v33 }
 0x371   : > { %v751_v35 = vmul.f32 1.442695, %v750_v34 }
 0x372   : > { %v594_v36 = vpop.permute.xlu1 %593 }
 0x373   : > { %1277 = vpow2.f32 %v751_v35  ;;  %1141 = vmatpush3.msra.mxu1 %v594_v36 }
 0x374   : > { %1150 = vmatprep.subr.mxu1 %v1516_v1 }
 0x37d   : > { %v1278_v37 = vpop.eup %1277 }
 0x37e   : > { %v753_v38 = vsel %vm581_vm3, %v1278_v37, 0.0 }
 0x37f   : > { %754 = vadd.xlane.f32.xlu1 %v753_v38 }
 0x390   : > { %758 = vrot.lane.b32.xlu1 %v500_v16, %s1519_s30 }
 0x398   : > { %v590_v39 = vpop.xlane.xlu0 %589 }
 0x399   : > { %1279 = vrcp.f32 %v590_v39 }
 0x3a3   : > { %v1280_v40 = vpop.eup %1279 }
 0x3a4   : > { %v592_v41 = vmul.f32 %v1280_v40, %v1276_v31 }
 0x3a6   : > { %1143 = vmatmul.mubr.msk.f32.vlgmr.msra.gmra.mrb[4].mxu1 %vm581_vm3, %v592_v41 }
 0x3a7   : > { %1152 = vmatprep.mubr.msk.f32.mxu1 %vm1515_vm0, %v1516_v1 }
 0x40c   : > { %v755_v42 = vpop.xlane.xlu1 %754 }
 0x40d   : > { %1281 = vrcp.f32 %v755_v42 }
 0x410   : > { %v759_v43 = vpop.permute.xlu1 %758 }
 0x411   : > { %1151 = vmatpush3.msra.mxu1 %v759_v43 }
 0x417   : > { %v1282_v44 = vpop.eup %1281 }
 0x418   : > { %v757_v45 = vmul.f32 %v1282_v44, %v1278_v37 }
 0x41a   : > { %1153 = vmatmul.mubr.msk.f32.vlgmr.msra.gmra.mrb[6].mxu1 %vm581_vm3, %v757_v45 }
 0x479   : > { %v665_v52 = vpop.f32.mrb[4].mxu1 }
 0x47a   : > { %v1144_v53 = vpop.f32.mrb[5].mxu1 }
 0x4ed   : > { %v830_v54 = vpop.f32.mrb[6].mxu1 }
 0x4ee   : > { %835 = vrot.lane.b32.xlu1 %v830_v54, %s1520_s16  ;;  %v1154_v55 = vpop.f32.mrb[7].mxu1 }
 0x560   : > { %v836_v56 = vpop.permute.xlu1 %835 }
 0x561   : > { %v838_v57 = vsel %vm504_vm2, %v665_v52, %v836_v56 }
 0x562   : > { %1164 = vmatmul.mubr.msk.f32.vlgmr.msra.gmra.mrb[4].mxu0 %vm353_vm1, %v838_v57 }
 0x635   : > { %v919_v59 = vpop.f32.mrb[4].mxu0 }
 0x636   : > { %v920_v60 = vadd.f32 %v1084_v58, %v919_v59  ;;  %v1165_v61 = vpop.f32.mrb[5].mxu0 }
 0x638   : > { %923 = vst.msk [vmem:[%s346_s12] sm:$0xff] %vm353_vm1, %v920_v60 }
 0x639   : > { %1440 = shalt.err (!%p1437_p10)
}
 0x63a   : > { %s1441_s2 = scalar_lea.hbm %s1860_s9, 128  ;;  %s1445_s11 = scalar_lea.hbm %s1911_s6, 256 }
 0x63b   : > { %p1442_p13 = scmp.ne.s32.totalorder %s1860_s9, %s1441_s2  ;;  %p1446_p9 = scmp.lt.u32.totalorder %s1860_s9, %s1911_s6 }
 0x63c   : > { %p1447_p3 = scmp.lt.u32.totalorder %s1445_s11, %s1441_s2  ;;  %p1449_p12 = scmp.lt.u32.totalorder %s1441_s2, %s1860_s9 }
 0x63d   : > { %p1443_p5 = pnand %p1442_p13, %p1936_p1 }
 0x63e   : > { %p1448_p7 = por %p1447_p3, %p1446_p9 }
 0x63f   : > { %p1444_p11 = pneg %p1443_p5 }
 0x640   : > { %p1450_p2 = por %p1449_p12, %p1448_p7 }
 0x642   : > { %p1451_p4 = pnand %p1450_p2, %p1444_p11 }
 0x644   : > { %1454 = shalt.err (!%p1451_p4)
}
 0x645   : > { %1200 = dma.vmem_to_hbm [thread:$0]  (%p1936_p1), %s1862_s19, 128, %s1860_s9, %s925_s20  }
 0x646 PF: > { %s950_s17 = sand.u32 1, %s1493_s21   ;;  %p1937_p0 = scmp.ne.s32.totalorder %s1920_s28, 0 }
 0x647   : > { %p1938_p8 = scmp.ge.s32.totalorder %s1505_s24, 2  ;;  %s951_s10 = scalar_lea.sflag [#allocation4], %s950_s17 }
 0x649   : > { %p1220_p6 = pnand %p1938_p8, %p1937_p0 }
 0x64b   : > { %1488 = dma.done.wait (!%p1220_p6), %s951_s10, 128  }
 0x64c   : > { %1490 = vsyncadd (!%p1220_p6), %s951_s10, 4294967168  ;;  %p23_p10 = scmp.ge.s32.totalorder %s1697_s18, 4   ;;  %s1939_s21 = smov %s1497_s22 }
 0x64d   : > { %s1940_s22 = smov %s1501_s23  ;;  %s1941_s23 = smov %s1707_s14 }
 0x64e   : > { %s1942_s24 = smov %s1697_s18  ;;  %25 = sbr.rel (!%p23_p10) target bundleno = 12 (0xc), region = 114 }
 0x655   :  { %956 = vsyncpa [#allocation3], 1 }
 0x656   :  { %958 = vsyncpa [#allocation3 + $0x1], 1 }
 0x657   :  { %959 = vsyncpa [#allocation6], 1 }
 0x658   :  { %961 = vsyncpa [#allocation6 + $0x1], 1 }
 0x659   :  { %962 = vsyncpa [#allocation9], 1 }
 0x65a   :  { %963 = vsyncpa [#allocation4], 1 }
 0x65b   :  { %965 = vsyncpa [#allocation4 + $0x1], 1 }

</bundles_post_ra>
